<compile_context>
chip_gen: v7x
topology: tpu7x:2x2x1
jax: 0.10.0
libtpu: 0.0.40
codegen_flags: <defaults>
</compile_context>

<pallas_src>
import jax
import jax.numpy as jnp
import numpy as np
from jax.experimental import pallas as pl
from jax.experimental.pallas import tpu as pltpu

SCALE = 0.09
EPS = 1e-6


def _cos_linear_kernel(x_ref, w_ref, iw_ref, o_ref, xsq_ref):
    """Grid point (i, j, k).

    x_ref  : (tm, tk) raw activation tile
    w_ref  : (tn, tk) raw weight tile (native PyTorch layout, no transpose)
    iw_ref : (1,  tn) 1 / (||w_j|| + eps)
    o_ref  : (tm, tn) f32 output block == accumulator (resident across k)
    xsq_ref: (tm, 1)  f32 scratch, running sum of x_i^2 over K
    """
    k = pl.program_id(2)

    @pl.when(k == 0)
    def _init():
        o_ref[...] = jnp.zeros_like(o_ref)
        xsq_ref[...] = jnp.zeros_like(xsq_ref)

    x = x_ref[...]
    # Raw-operand MXU contraction over the last dims of both tiles:
    # (tm, tk) . (tn, tk)^T -> (tm, tn), f32 accumulation.
    o_ref[...] += jax.lax.dot_general(
        x, w_ref[...],
        dimension_numbers=(((1,), (1,)), ((), ())),
        preferred_element_type=jnp.float32)

    # Fused x-row sum-of-squares; VPU/XLU slots are idle under the MXU/DMA
    # bound, so this is essentially free.
    xf = x.astype(jnp.float32)
    xsq_ref[...] += jnp.sum(xf * xf, axis=1, keepdims=True)

    @pl.when(k == pl.num_programs(2) - 1)
    def _finalize():
        # out_ij = acc_ij / (scale * (||x_i|| + eps)) * (1 / (||w_j|| + eps))
        inv_x = (1.0 / SCALE) / (jnp.sqrt(xsq_ref[...]) + EPS)
        o_ref[...] = o_ref[...] * inv_x * iw_ref[...]


def _round_up(v, m):
    return ((v + m - 1) // m) * m


def _cdiv(a, b):
    return -(-a // b)


def _pick_tile(dim, cap, align):
    """Aligned tile <= cap minimizing padding. Never a full unaligned/oversized
    dimension tile (fixes the old full-dim fallback VMEM blowup)."""
    cap = max((cap // align) * align, align)
    if dim <= cap:
        return _round_up(dim, align)
    n_tiles = _cdiv(dim, cap)
    return _round_up(_cdiv(dim, n_tiles), align)


def _pad2d(a, rows, cols):
    pr, pc = rows - a.shape[0], cols - a.shape[1]
    if pr == 0 and pc == 0:
        return a
    return jnp.pad(a, ((0, pr), (0, pc)))


def prepare_weight_inv_norm(weight):
    """(1, outdim) = 1 / (||W_j||_2 + eps).  Cacheable across cos_linear calls."""
    wf = weight.astype(jnp.float32)
    return 1.0 / (jnp.sqrt(jnp.sum(wf * wf, axis=1, keepdims=True)).T + EPS)


def cos_linear(x, weight, inv_w=None, *, tm_cap=512, tn_cap=1024, tk_cap=1024):
    """x: (B, indim), weight: (outdim, indim) (PyTorch layout) -> (B, outdim) f32."""
    B, indim = x.shape
    outdim, indim_w = weight.shape
    assert indim == indim_w

    if inv_w is None:
        inv_w = prepare_weight_inv_norm(weight)

    tm = _pick_tile(B, tm_cap, 8)
    tn = _pick_tile(outdim, tn_cap, 128)
    tk = _pick_tile(indim, tk_cap, 128)

    # v7x: ensure >= 2 parallel (M, N) blocks so both TensorCores get work.
    while _cdiv(B, tm) * _cdiv(outdim, tn) < 2:
        if tn % 256 == 0:
            tn //= 2
        elif tm % 16 == 0:
            tm //= 2
        else:
            break

    gm, gn, gk = _cdiv(B, tm), _cdiv(outdim, tn), _cdiv(indim, tk)
    Bp, Np, Kp = gm * tm, gn * tn, gk * tk

    # Ragged-dim zero padding (no-op when shapes already align). Zero rows /
    # columns contribute zero scores and are sliced off below.
    x_p = _pad2d(x, Bp, Kp)
    w_p = _pad2d(weight, Np, Kp)
    iw_p = _pad2d(inv_w, 1, Np)

    x_bytes = jnp.dtype(x.dtype).itemsize
    w_bytes = jnp.dtype(weight.dtype).itemsize
    blk_bytes = (tm * tk * x_bytes + tn * tk * w_bytes
                 + tm * tn * 4 + tn * 4 + tm * 4)
    # Explicit scoped-VMEM budget: >= double-buffered footprint with headroom,
    # above v5e's 16 MiB default, well under v7x's 64 MiB physical.
    vmem_limit = int(min(max(3 * blk_bytes, 32 * 1024 * 1024), 56 * 1024 * 1024))

    cost = pl.CostEstimate(
        flops=2 * B * indim * outdim,
        bytes_accessed=(B * indim * x_bytes + outdim * indim * w_bytes
                        + B * outdim * 4),
        transcendentals=B,
    )

    out = pl.pallas_call(
        _cos_linear_kernel,
        out_shape=jax.ShapeDtypeStruct((Bp, Np), jnp.float32),
        grid_spec=pltpu.PrefetchScalarGridSpec(
            num_scalar_prefetch=0,
            grid=(gm, gn, gk),
            in_specs=[
                pl.BlockSpec((tm, tk), lambda i, j, k: (i, k)),   # x
                pl.BlockSpec((tn, tk), lambda i, j, k: (j, k)),   # W (native layout)
                pl.BlockSpec((1, tn), lambda i, j, k: (0, j)),    # 1/(||w_j||+eps)
            ],
            out_specs=pl.BlockSpec((tm, tn), lambda i, j, k: (i, j)),
            scratch_shapes=[pltpu.VMEM((tm, 1), jnp.float32)],
        ),
        compiler_params=pltpu.CompilerParams(
            dimension_semantics=("parallel", "parallel", "arbitrary"),
            vmem_limit_bytes=vmem_limit),
        cost_estimate=cost,
    )(x_p, w_p, iw_p)

    if Bp != B or Np != outdim:
        out = out[:B, :outdim]
    return out


def _reference(x, weight):
    x64 = np.asarray(x, np.float64)
    w64 = np.asarray(weight, np.float64)
    x_n = x64 / (np.linalg.norm(x64, axis=1, keepdims=True) + EPS)
    w_n = w64 / (np.linalg.norm(w64, axis=1, keepdims=True) + EPS)
    return (x_n @ w_n.T) / SCALE


if __name__ == "__main__":
    key = jax.random.PRNGKey(0)

    def make_inputs(k, B, indim, outdim):
        k_x, k_w = jax.random.split(k)
        x = jax.random.normal(k_x, (B, indim), dtype=jnp.float32)
        # Deterministic kaiming_normal_(a=2.0, mode='fan_out', 'relu'):
        # gain = sqrt(2), fan_out = outdim, std = gain / sqrt(fan_out).
        std = float(np.sqrt(2.0) / np.sqrt(outdim))
        w = std * jax.random.normal(k_w, (outdim, indim), dtype=jnp.float32)
        return x, w

    k1, k2 = jax.random.split(key)

    # Case 1: aligned shapes; exercises the (1,1)->(1,2) parallel grid split.
    x1, w1 = make_inputs(k1, 8, 1024, 256)
    out1 = jax.block_until_ready(cos_linear(x1, w1))
    np.testing.assert_allclose(np.asarray(out1), _reference(x1, w1),
                               rtol=1e-4, atol=1e-4)

    # Case 2: ragged shapes; exercises padding + multi-step K accumulation.
    x2, w2 = make_inputs(k2, 6, 1100, 200)
    out2 = jax.block_until_ready(cos_linear(x2, w2, tk_cap=512))
    np.testing.assert_allclose(np.asarray(out2), _reference(x2, w2),
                               rtol=1e-4, atol=1e-4)

    print("KERNEL_OK")
</pallas_src>

<mosaic_0001>
module attributes {stable_mosaic.version = 11 : i64} {
  func.func @_cos_linear_kernel(%arg0: i32, %arg1: i32, %arg2: i32, %arg3: memref<8x1024xf32, #tpu.memory_space<vmem>>, %arg4: memref<128x1024xf32, #tpu.memory_space<vmem>>, %arg5: memref<1x128xf32, #tpu.memory_space<vmem>>, %arg6: memref<8x128xf32, #tpu.memory_space<vmem>>, %arg7: memref<8x1xf32, #tpu.memory_space<vmem>>) attributes {dimension_semantics = [#tpu.dimension_semantics<parallel>, #tpu.dimension_semantics<parallel>, #tpu.dimension_semantics<arbitrary>], iteration_bounds = array<i64: 1, 2, 1>, scalar_prefetch = 0 : i64, scratch_operands = 1 : i64, tpu.core_type = #tpu.core_type<tc>, window_params = [{transform_indices = @transform_0, window_bounds = array<i64: 8, 1024>}, {transform_indices = @transform_1, window_bounds = array<i64: 128, 1024>}, {transform_indices = @transform_2, window_bounds = array<i64: 1, 128>}, {transform_indices = @transform_3, window_bounds = array<i64: 8, 128>}]} {
    %c0_i32 = arith.constant 0 : i32
    %0 = arith.cmpi eq, %arg2, %c0_i32 : i32
    %1 = arith.extui %0 : i1 to i32
    %c0_i32_0 = arith.constant 0 : i32
    %2 = arith.cmpi ne, %1, %c0_i32_0 : i32
    scf.if %2 {
      %cst_15 = arith.constant 0.000000e+00 : f32
      %18 = vector.broadcast %cst_15 : f32 to vector<8x128xf32>
      %c0_16 = arith.constant 0 : index
      %c0_17 = arith.constant 0 : index
      %19 = vector.load %arg6[%c0_16, %c0_17] : memref<8x128xf32, #tpu.memory_space<vmem>>, vector<8x128xf32>
      tpu.vector_store %arg6[%c0_16, %c0_17], %18 {strides = array<i32>} : memref<8x128xf32, #tpu.memory_space<vmem>>, vector<8x128xf32>,
      %cst_18 = arith.constant 0.000000e+00 : f32
      %20 = vector.broadcast %cst_18 : f32 to vector<8x1xf32>
      %c0_19 = arith.constant 0 : index
      %c0_20 = arith.constant 0 : index
      %21 = vector.load %arg7[%c0_19, %c0_20] : memref<8x1xf32, #tpu.memory_space<vmem>>, vector<8x1xf32>
      tpu.vector_store %arg7[%c0_19, %c0_20], %20 {strides = array<i32>} : memref<8x1xf32, #tpu.memory_space<vmem>>, vector<8x1xf32>,
    } else {
    }
    %c0 = arith.constant 0 : index
    %c0_1 = arith.constant 0 : index
    %3 = vector.load %arg3[%c0, %c0_1] : memref<8x1024xf32, #tpu.memory_space<vmem>>, vector<8x1024xf32>
    %c0_2 = arith.constant 0 : index
    %c0_3 = arith.constant 0 : index
    %4 = vector.load %arg6[%c0_2, %c0_3] : memref<8x128xf32, #tpu.memory_space<vmem>>, vector<8x128xf32>
    %c0_4 = arith.constant 0 : index
    %c0_5 = arith.constant 0 : index
    %5 = vector.load %arg4[%c0_4, %c0_5] : memref<128x1024xf32, #tpu.memory_space<vmem>>, vector<128x1024xf32>
    %cst = arith.constant dense<0.000000e+00> : vector<8x128xf32>
    %6 = tpu.matmul %3, %5, %cst {dimension_numbers = #tpu.dot_dimension_numbers<[1], [1], [0], [0], [0, 0, 1, 0], [], []>} : vector<8x1024xf32>, vector<128x1024xf32>, vector<8x128xf32> -> vector<8x128xf32>
    %7 = arith.addf %4, %6 : vector<8x128xf32>
    %c0_6 = arith.constant 0 : index
    %c0_7 = arith.constant 0 : index
    %8 = vector.load %arg6[%c0_6, %c0_7] : memref<8x128xf32, #tpu.memory_space<vmem>>, vector<8x128xf32>
    tpu.vector_store %arg6[%c0_6, %c0_7], %7 {strides = array<i32>} : memref<8x128xf32, #tpu.memory_space<vmem>>, vector<8x128xf32>,
    %c0_8 = arith.constant 0 : index
    %c0_9 = arith.constant 0 : index
    %9 = vector.load %arg7[%c0_8, %c0_9] : memref<8x1xf32, #tpu.memory_space<vmem>>, vector<8x1xf32>
    %10 = arith.mulf %3, %3 : vector<8x1024xf32>
    %cst_10 = arith.constant dense<0.000000e+00> : vector<8xf32>
    %11 = vector.multi_reduction <add>, %10, %cst_10 [1] : vector<8x1024xf32> to vector<8xf32>
    %12 = vector.shape_cast %11 : vector<8xf32> to vector<8x1xf32>
    %13 = arith.addf %9, %12 : vector<8x1xf32>
    %c0_11 = arith.constant 0 : index
    %c0_12 = arith.constant 0 : index
    %14 = vector.load %arg7[%c0_11, %c0_12] : memref<8x1xf32, #tpu.memory_space<vmem>>, vector<8x1xf32>
    tpu.vector_store %arg7[%c0_11, %c0_12], %13 {strides = array<i32>} : memref<8x1xf32, #tpu.memory_space<vmem>>, vector<8x1xf32>,
    %c0_i32_13 = arith.constant 0 : i32
    %15 = arith.cmpi eq, %arg2, %c0_i32_13 : i32
    %16 = arith.extui %15 : i1 to i32
    %c0_i32_14 = arith.constant 0 : i32
    %17 = arith.cmpi ne, %16, %c0_i32_14 : i32
    scf.if %17 {
      %c0_15 = arith.constant 0 : index
      %c0_16 = arith.constant 0 : index
      %18 = vector.load %arg7[%c0_15, %c0_16] : memref<8x1xf32, #tpu.memory_space<vmem>>, vector<8x1xf32>
      %19 = math.sqrt %18 : vector<8x1xf32>
      %cst_17 = arith.constant 9.99999997E-7 : f32
      %20 = vector.broadcast %cst_17 : f32 to vector<8x1xf32>
      %21 = arith.addf %19, %20 : vector<8x1xf32>
      %cst_18 = arith.constant 11.1111107 : f32
      %22 = vector.broadcast %cst_18 : f32 to vector<8x1xf32>
      %23 = arith.divf %22, %21 : vector<8x1xf32>
      %c0_19 = arith.constant 0 : index
      %c0_20 = arith.constant 0 : index
      %24 = vector.load %arg6[%c0_19, %c0_20] : memref<8x128xf32, #tpu.memory_space<vmem>>, vector<8x128xf32>
      %25 = vector.broadcast %23 : vector<8x1xf32> to vector<8x128xf32>
      %26 = arith.mulf %24, %25 : vector<8x128xf32>
      %c0_21 = arith.constant 0 : index
      %c0_22 = arith.constant 0 : index
      %27 = vector.load %arg5[%c0_21, %c0_22] : memref<1x128xf32, #tpu.memory_space<vmem>>, vector<1x128xf32>
      %28 = vector.broadcast %27 : vector<1x128xf32> to vector<8x128xf32>
      %29 = arith.mulf %26, %28 : vector<8x128xf32>
      %c0_23 = arith.constant 0 : index
      %c0_24 = arith.constant 0 : index
      %30 = vector.load %arg6[%c0_23, %c0_24] : memref<8x128xf32, #tpu.memory_space<vmem>>, vector<8x128xf32>
      tpu.vector_store %arg6[%c0_23, %c0_24], %29 {strides = array<i32>} : memref<8x128xf32, #tpu.memory_space<vmem>>, vector<8x128xf32>,
    } else {
    }
    return
  }
  func.func @transform_0(%arg0: i32, %arg1: i32, %arg2: i32) -> (i32, i32) {
    %c0_i32 = arith.constant 0 : i32
    return %arg0, %arg2 : i32, i32
  }
  func.func @transform_1(%arg0: i32, %arg1: i32, %arg2: i32) -> (i32, i32) {
    %c0_i32 = arith.constant 0 : i32
    return %arg1, %arg2 : i32, i32
  }
  func.func @transform_2(%arg0: i32, %arg1: i32, %arg2: i32) -> (i32, i32) {
    %c0_i32 = arith.constant 0 : i32
    %c0_i32_0 = arith.constant 0 : i32
    return %c0_i32, %arg1 : i32, i32
  }
  func.func @transform_3(%arg0: i32, %arg1: i32, %arg2: i32) -> (i32, i32) {
    %c0_i32 = arith.constant 0 : i32
    return %arg0, %arg1 : i32, i32
  }
}

</mosaic_0001>

<bundles_post_ra>
// kernel: tpu_custom_call.1
= control target key start
LH: loop header
LB: loop body
LE: loop exit
PB: predicated region body
PF: predicated region fallthrough
CT: control target
= control target key end

     0   :  { %8 = vsyncpa [#allocation4], 0  ;;  %s1652_s0 = inlined_call_operand.hbm [shape: f32[8,1024], index: 0, kind: input, shape index: {}]   ;;  %s1653_s1 = inlined_call_operand.hbm [shape: f32[256,1024], index: 1, kind: input, shape index: {}]   ;;  %s1654_s2 = inlined_call_operand.vmem [shape: f32[1,256], index: 2, kind: input, shape index: {}]   ;;  %s1655_s3 = inlined_call_operand.hbm [shape: f32[8,256], index: 3, kind: output, shape index: {}]  }
   0x1   :  { %9 = vsyncpa [#allocation7], 0 }
   0x2   :  { %11 = vsyncpa [#allocation7 + $0x1], 0 }
   0x3   :  { %12 = vsyncpa [#allocation5], 0 }
   0x4   :  { %14 = vsyncpa [#allocation5 + $0x1], 0  ;;  %s1265_s12 = smov 0   ;;  %s1267_s13 = smov 0  }
   0x5   :  { %s1269_s14 = smov 0   ;;  %s1271_s15 = smov 0  }
   0x6   :  { %s1273_s16 = smov 0   ;;  %s1275_s17 = smov 0  }
   0x7 LB: > { %s862_s18 = sadd.s32 4294967295, %s1236_s17   ;;  %s863_s19 = sadd.s32 4294967294, %s1236_s17   ;;  %s1236_s17 = sphi %s1275_s17, %s20_s17   ;;  %s1232_s16 = sphi %s1273_s16, %s1683_s16   ;;  %s1228_s15 = sphi %s1271_s15, %s1682_s15   ;;  %s1224_s14 = sphi %s1269_s14, %s1681_s14   ;;  %s1220_s13 = sphi %s1267_s13, %s1680_s13   ;;  %s1216_s12 = sphi %s1265_s12, %s1679_s12  }
   0x8   : > { %s76_s20 = sadd.s32 1, %s1224_s14  ;;  %p83_p0 = scmp.ne.s32.totalorder %s1224_s14, %s1220_s13 }
   0x9   : > { %p84_p1 = scmp.eq.s32.totalorder %s1236_s17, 0  ;;  %p89_p2 = scmp.ne.s32.totalorder %s1220_s13, %s1216_s12 }
   0xa   : > { %p1303_p3 = scmp.eq.s32.totalorder %s862_s18, 0  ;;  %p141_p4 = scmp.eq.s32.totalorder %s862_s18, 1 }
   0xb   : > { %p1307_p5 = por %p84_p1, %p83_p0  ;;  %p147_p6 = scmp.eq.s32.totalorder %s863_s19, 1 }
   0xc   : > { %s1662_s21 = scalar_select %p1303_p3, 1, 0 }
   0xd   : > { %p1313_p7 = por %p1303_p3, %p89_p2  ;;  %p1317_p8 = por %p141_p4, %p83_p0 }
   0xe   : > { %p1321_p9 = por %p147_p6, %p89_p2  ;;  %p864_p10 = scmp.ge.s32.totalorder %s1236_s17, 1 }
   0xf   : > { %s1664_s23 = scalar_select %p1313_p7, 1, 0 }
  0x10   : > { %s1665_s24 = scalar_select %p1317_p8, 1, 0 }
  0x11   : > { %s1666_s25 = scalar_select %p1321_p9, 1, 0 }
  0x12   : > { %p154_p11 = scmp.lt.s32.totalorder %s1236_s17, 3  ;;  %s1238_s27 = smov [#allocation3]  }
  0x13   : > { %s172_s28 = sshll.u32 %s1238_s27, 4  ;;  %p1031_p1 = scmp.lt.s32.totalorder %s1236_s17, 2  ;;  %s173_s28 = int_to_ptr.vmem [resolvable:$true] %s172_s28 }
  0x14   : > { %p1328_p13 = pnand %p864_p10, %p154_p11  ;;  %s35_s4 = sadd.s32 1, %s1232_s16 }
  0x15   : > { %p1337_p4 = pnand %p1031_p1, %p1307_p5  ;;  %p1348_p6 = scmp.ge.s32.totalorder %s35_s4, 2 }
  0x16   : > { %s1667_s26 = scalar_select %p1328_p13, 1, 0 }
  0x17   : > { %p1018_p0 = pneg %p1328_p13  ;;  %s183_s6 = sand.u32 1, %s1224_s14  }
  0x18   : > { %s1668_s29 = scalar_select %p1337_p4, 1, 0 }
  0x19   : > { %p1343_p2 = pnand %p1018_p0, %p1303_p3  ;;  %s1092_s9 = scalar_lea.hbm %s1652_s0, 1024 }
  0x1a   : > { %s1670_s5 = scalar_select %p1348_p6, 1, 0 }
  0x1b   : > { %p1093_p5 = scmp.ne.s32.totalorder %s1652_s0, %s1092_s9  ;;  %p1094_p10 = pneg %p1343_p2 }
  0x1c   : > { %p1099_p0 = scmp.lt.u32.totalorder %s1092_s9, %s1652_s0 }
  0x1d   : > { %p1095_p11 = pnand %p1094_p10, %p1093_p5 }
  0x1f   : > { %p1096_p1 = pneg %p1095_p11 }
  0x21   : > { %p1101_p12 = pnand %p1099_p0, %p1096_p1 }
  0x23   : > { %1104 = shalt.err (!%p1101_p12)
}
  0x24   : > { %s1105_s22 = scalar_lea.vmem %s173_s28, 1024  ;;  %p1113_p3 = scmp.lt.s32.totalorder %s173_s28, %s173_s28 }
  0x25   : > { %p1106_p9 = scmp.ne.s32.totalorder %s173_s28, %s1105_s22  ;;  %p1114_p13 = scmp.lt.s32.totalorder %s1105_s22, %s1105_s22 }
  0x27   : > { %p1108_p8 = pnand %p1106_p9, %p1094_p10  ;;  %p1115_p4 = por %p1114_p13, %p1113_p3 }
  0x29   : > { %p1109_p7 = pneg %p1108_p8 }
  0x2b   : > { %p1116_p6 = pnand %p1115_p4, %p1109_p7 }
  0x2d   : > { %1119 = shalt.err (!%p1116_p6)
}
  0x2e   : > { %1021 = dma.hbm_to_vmem [thread:$0]  (!%p1343_p2), %s1652_s0, 1024, %s173_s28, [#allocation4]  }
  0x2f   : > { %p1671_p9 = scmp.ne.s32.totalorder %s1670_s5, 0  ;;  %s867_s8 = sshll.u32 %s183_s6, 10 }
  0x30   : > { %s881_s10 = sshll.u32 %s1232_s16, 14  ;;  %s187_s19 = scalar_lea.vmem [#allocation6], %s867_s8 }
  0x31   : > { %s1685_s4 = smov (%p1671_p9, %s35_s4), 0  ;;  %s1379_s18 = scalar_lea.hbm %s1653_s1, %s881_s10 }
  0x32   : > { %s71_s9 = ssub.s32 %s1232_s16, %s1685_s4  ;;  %s197_s22 = sshll.u32 %s187_s19, 4  ;;  %s1386_s22 = int_to_ptr.vmem [resolvable:$true] %s197_s22 }
  0x33   : > { %p74_p3 = scmp.eq.s32.totalorder %s71_s9, 0  ;;  %s1388_s5 = scalar_lea.sflag [#allocation7], %s183_s6 }
  0x34   : > { %s1120_s27 = scalar_lea.hbm %s1379_s18, 16384  ;;  %p1672_p8 = scmp.ne.s32.totalorder %s1668_s29, 0 }
  0x35   : > { %s1384_s28 = scalar_select %p74_p3, %s1224_s14, %s76_s20  }
  0x36   : > { %p1121_p7 = scmp.ne.s32.totalorder %s1379_s18, %s1120_s27  ;;  %p1122_p12 = pneg %p1672_p8 }
  0x37   : > { %s1125_s8 = scalar_lea.hbm %s1653_s1, 32768  ;;  %p1126_p2 = scmp.lt.u32.totalorder %s1379_s18, %s1653_s1 }
  0x38   : > { %p1123_p13 = pnand %p1122_p12, %p1121_p7  ;;  %p1127_p6 = scmp.lt.u32.totalorder %s1125_s8, %s1120_s27 }
  0x39   : > { %p1129_p10 = scmp.lt.u32.totalorder %s1120_s27, %s1379_s18 }
  0x3a   : > { %p1124_p4 = pneg %p1123_p13  ;;  %p1128_p5 = por %p1127_p6, %p1126_p2 }
  0x3c   : > { %p1130_p11 = por %p1129_p10, %p1128_p5 }
  0x3e   : > { %p1131_p1 = pnand %p1130_p11, %p1124_p4 }
  0x40   : > { %1134 = shalt.err (!%p1131_p1)
}
  0x41   : > { %s1135_s20 = scalar_lea.vmem %s1386_s22, 16384  ;;  %s1239_s6 = smov [#allocation6]  }
  0x42   : > { %p1136_p0 = scmp.ne.s32.totalorder %s1386_s22, %s1135_s20  ;;  %s1140_s11 = sshll.u32 %s1239_s6, 4  ;;  %s1141_s11 = int_to_ptr.vmem [resolvable:$false] %s1140_s11 }
  0x43   : > { %s1142_s19 = scalar_lea.vmem %s1141_s11, 32768  ;;  %p1143_p7 = scmp.lt.s32.totalorder %s1386_s22, %s1141_s11 }
  0x44   : > { %p1138_p9 = pnand %p1136_p0, %p1122_p12  ;;  %p1144_p13 = scmp.lt.s32.totalorder %s1142_s19, %s1135_s20 }
  0x46   : > { %p1139_p3 = pneg %p1138_p9  ;;  %p1145_p2 = por %p1144_p13, %p1143_p7 }
  0x48   : > { %p1146_p6 = pnand %p1145_p2, %p1139_p3 }
  0x4a   : > { %1149 = shalt.err (!%p1146_p6)
}
  0x4b   : > { %s1240_s27 = smov 1024   ;;  %s1241_s7 = smov 64  }
  0x4c   : > { %1025 = dma.hbm_to_vmem [thread:$0]  (!%p1672_p8), %s1379_s18, 16384, %s1386_s22, %s1388_s5, %s1240_s27, %s1240_s27, %s1241_s7  }
  0x4d   : > { %p1673_p12 = scmp.ne.s32.totalorder %s1667_s26, 0 }
  0x4e   : > { %p1674_p4 = scmp.ne.s32.totalorder (!%p1673_p12), %s1662_s21, 0 }
  0x4f   : > { %215 = sbr.rel (%p1673_p12) target bundleno = 457 (0x1c9), region = 32 }
  0x56   : > { %1203 = dma.done.wait (%p1674_p4), [#allocation4], 1024  }
  0x57   : > { %1205 = vsyncadd (%p1674_p4), [#allocation4], 4294966272  ;;  %s1423_s9 = sand.u32 1, %s1220_s13   ;;  %p1675_p8 = scmp.ne.s32.totalorder %s1664_s23, 0 }
  0x58   : > { %s873_s8 = sshll.u32 %s1423_s9, 10  ;;  %s222_s10 = scalar_lea.sflag [#allocation7], %s1423_s9 }
  0x59   : > { %s1427_s30 = scalar_lea.vmem [#allocation6], %s873_s8 }
  0x5a   : > { %1207 = dma.done.wait (%p1675_p8), %s222_s10, 16384  }
  0x5b   : > { %1209 = vsyncadd (%p1675_p8), %s222_s10, 4294950912  ;;  %v274_v0 = vld [vmem:[%s1427_s30 + $0x8] sm:$0xff]  ;;  %v273_v2 = vld [vmem:[%s1427_s30] sm:$0xff]  ;;  %vm262_vm0 = vcmask 7168   ;;  %v1242_v21 = vmov 0.0   ;;  %p254_p5 = scmp.lt.s32.totalorder %s1228_s15, 1 }
  0x5c   : > { %v282_v1 = vld [vmem:[%s1427_s30 + $0x48] sm:$0xff]  ;;  %v281_v4 = vld [vmem:[%s1427_s30 + $0x40] sm:$0xff]  ;;  %v276_v5 = vld [vmem:[%s1427_s30 + $0x18] sm:$0xff]  ;;  %263 = vst.msk [vmem:[#allocation2] sm:$0xff] %vm262_vm0, %v1242_v21  ;;  %s874_s23 = sshll.u32 %s1423_s9, 3  ;;  %s877_s22 = sshll.u32 %s1228_s15, 7 }
  0x5d   : > { %v882_v3 = vpack.c.bf16 %v282_v1, %v274_v0  ;;  %v284_v6 = vld [vmem:[%s1427_s30 + $0x58] sm:$0xff]  ;;  %v884_v7 = vpack.c.bf16 %v281_v4, %v273_v2  ;;  %v275_v9 = vld [vmem:[%s1427_s30 + $0x10] sm:$0xff]  ;;  %v290_v11 = vld [vmem:[%s1427_s30 + $0x88] sm:$0xff]  ;;  %s255_s21 = scalar_select %p254_p5, %s1228_s15, 1 }
  0x5e   : > { %v914_v8 = vpack.c.bf16 %v284_v6, %v276_v5  ;;  %v283_v10 = vld [vmem:[%s1427_s30 + $0x50] sm:$0xff]  ;;  %v298_v13 = vld [vmem:[%s1427_s30 + $0xc8] sm:$0xff]  ;;  %v292_v15 = vld [vmem:[%s1427_s30 + $0x98] sm:$0xff]  ;;  %s250_s5 = scalar_lea.vmem [#allocation8], %s874_s23  ;;  %s1603_s19 = scalar_lea.hbm %s1655_s3, %s877_s22 }
  0x5f   : > { %883 = vmatprep.subr.bf16.mxu0 %v882_v3  ;;  %v916_v12 = vpack.c.bf16 %v283_v10, %v275_v9  ;;  %v886_v14 = vpack.c.bf16 %v298_v13, %v290_v11  ;;  %v300_v16 = vld [vmem:[%s1427_s30 + $0xd8] sm:$0xff]  ;;  %v289_v17 = vld [vmem:[%s1427_s30 + $0x80] sm:$0xff]  ;;  %v291_v20 = vld [vmem:[%s1427_s30 + $0x90] sm:$0xff]  ;;  %s256_s18 = scalar_lea.vmem %s1654_s2, %s255_s21  ;;  %s750_s20 = sshll.u32 %s250_s5, 4  ;;  %s1605_s20 = int_to_ptr.vmem [resolvable:$true] %s750_s20 }
  0x60   : > { %885 = vmatpush1.bf16.xpose.msra.mxu0 %v884_v7  ;;  %915 = vmatprep.subr.bf16.mxu1 %v914_v8  ;;  %v297_v18 = vld [vmem:[%s1427_s30 + $0xc0] sm:$0xff]  ;;  %v918_v19 = vpack.c.bf16 %v300_v16, %v292_v15  ;;  %v299_v22 = vld [vmem:[%s1427_s30 + $0xd0] sm:$0xff]  ;;  %v306_v23 = vld [vmem:[%s1427_s30 + $0x108] sm:$0xff]  ;;  %s735_s27 = scalar_lea.sflag [#allocation5], %s1423_s9  ;;  %s1150_s7 = scalar_lea.vmem %s1605_s20, 128 }
  0x61   : > { %917 = vmatpush1.bf16.xpose.msra.mxu1 %v916_v12  ;;  %887 = vmatprep.subr.bf16.mxu0 %v886_v14  ;;  %v314_v24 = vld [vmem:[%s1427_s30 + $0x148] sm:$0xff]  ;;  %v308_v25 = vld [vmem:[%s1427_s30 + $0x118] sm:$0xff]  ;;  %v888_v27 = vpack.c.bf16 %v297_v18, %v289_v17  ;;  %v920_v28 = vpack.c.bf16 %v299_v22, %v291_v20  ;;  %v1454_v31 = vld [vmem:[#allocation3] sm:$0xff]  ;;  %p1151_p10 = scmp.ne.s32.totalorder %s1605_s20, %s1150_s7  ;;  %p1676_p11 = scmp.ne.s32.totalorder %s1665_s24, 0 }
  0x62   : > { %919 = vmatprep.subr.bf16.mxu1 %v918_v19  ;;  %v316_v26 = vld [vmem:[%s1427_s30 + $0x158] sm:$0xff]  ;;  %v890_v29 = vpack.c.bf16 %v314_v24, %v306_v23  ;;  %v265_v32 = vld [vmem:[#allocation3 + $0x8] sm:$0xff]  ;;  %v1456_v33 = vld [vmem:[#allocation3 + $0x10] sm:$0xff]  ;;  %v684_v35 = vmul.f32 %v1454_v31, %v1454_v31  ;;  %s1244_s15 = smov [#allocation8]  }
  0x63   : > { %v922_v30 = vpack.c.bf16 %v316_v26, %v308_v25  ;;  %v267_v34 = vld [vmem:[#allocation3 + $0x18] sm:$0xff]  ;;  %v305_v36 = vld [vmem:[%s1427_s30 + $0x100] sm:$0xff]  ;;  %v685_v37 = vmul.f32 %v265_v32, %v265_v32  ;;  %v686_v38 = vmul.f32 %v1456_v33, %v1456_v33  ;;  %465 = vmatprep.mubr.f32.mxu0 %v265_v32  ;;  %v307_v40 = vld [vmem:[%s1427_s30 + $0x110] sm:$0xff]  ;;  %p1152_p1 = pnand %p1151_p10, %p1676_p11  ;;  %s1154_s8 = sshll.u32 %s1244_s15, 4  ;;  %s1155_s8 = int_to_ptr.vmem [resolvable:$false] %s1154_s8 }
  0x64   : > { %v313_v39 = vld [vmem:[%s1427_s30 + $0x140] sm:$0xff]  ;;  %v315_v42 = vld [vmem:[%s1427_s30 + $0x150] sm:$0xff]  ;;  %v322_v43 = vld [vmem:[%s1427_s30 + $0x188] sm:$0xff]  ;;  %v687_v45 = vmul.f32 %v267_v34, %v267_v34  ;;  %535 = vmatprep.mubr.f32.mxu1 %v267_v34  ;;  %s1156_s10 = scalar_lea.vmem %s1155_s8, 256  ;;  %p1157_p9 = scmp.lt.s32.totalorder %s1605_s20, %s1155_s8 }
  0x65   : > { %v1465_v41 = vld [vmem:[#allocation3 + $0x20] sm:$0xff]  ;;  %v330_v44 = vld [vmem:[%s1427_s30 + $0x1c8] sm:$0xff]  ;;  %v692_v46 = vadd.f32 %v685_v37, %v684_v35  ;;  %v324_v47 = vld [vmem:[%s1427_s30 + $0x198] sm:$0xff]  ;;  %v892_v50 = vpack.c.bf16 %v313_v39, %v305_v36  ;;  %v924_v53 = vpack.c.bf16 %v315_v42, %v307_v40  ;;  %p1153_p0 = pneg %p1152_p1  ;;  %p1158_p3 = scmp.lt.s32.totalorder %s1156_s10, %s1150_s7 }
  0x66   : > { %v332_v48 = vld [vmem:[%s1427_s30 + $0x1d8] sm:$0xff]  ;;  %v1472_v49 = vld [vmem:[#allocation3 + $0x28] sm:$0xff]  ;;  %v688_v51 = vmul.f32 %v1465_v41, %v1465_v41  ;;  %v894_v54 = vpack.c.bf16 %v330_v44, %v322_v43  ;;  %v1476_v55 = vld [vmem:[#allocation3 + $0x30] sm:$0xff] }
  0x67   : > { %v693_v52 = vadd.f32 %v692_v46, %v686_v38  ;;  %v926_v56 = vpack.c.bf16 %v332_v48, %v324_v47  ;;  %v689_v57 = vmul.f32 %v1472_v49, %v1472_v49  ;;  %v1480_v59 = vld [vmem:[#allocation3 + $0x38] sm:$0xff]  ;;  %v690_v60 = vmul.f32 %v1476_v55, %v1476_v55  ;;  %v321_v62 = vld [vmem:[%s1427_s30 + $0x180] sm:$0xff]  ;;  %v323_v0 = vld [vmem:[%s1427_s30 + $0x190] sm:$0xff]  ;;  %p1159_p7 = por %p1158_p3, %p1157_p9 }
  0x68   : > { %889 = vmatpush1.bf16.xpose.msra.mxu0 %v888_v27  ;;  %v329_v63 = vld [vmem:[%s1427_s30 + $0x1c0] sm:$0xff]  ;;  %v331_v1 = vld [vmem:[%s1427_s30 + $0x1d0] sm:$0xff]  ;;  %v691_v2 = vmul.f32 %v1480_v59, %v1480_v59  ;;  %v338_v4 = vld [vmem:[%s1427_s30 + $0x208] sm:$0xff]  ;;  %v1243_v47 = vmov 0  }
  0x69   : > { %921 = vmatpush1.bf16.xpose.msra.mxu1 %v920_v28  ;;  %891 = vmatprep.subr.bf16.mxu0 %v890_v29  ;;  %v694_v58 = vadd.f32 %v693_v52, %v687_v45  ;;  %v346_v5 = vld [vmem:[%s1427_s30 + $0x248] sm:$0xff]  ;;  %v340_v6 = vld [vmem:[%s1427_s30 + $0x218] sm:$0xff]  ;;  %v896_v8 = vpack.c.bf16 %v329_v63, %v321_v62  ;;  %v928_v10 = vpack.c.bf16 %v331_v1, %v323_v0  ;;  %v337_v14 = vld [vmem:[%s1427_s30 + $0x200] sm:$0xff]  ;;  %p1160_p13 = pnand %p1159_p7, %p1153_p0 }
  0x6a   : > { %923 = vmatprep.subr.bf16.mxu1 %v922_v30  ;;  %v348_v7 = vld [vmem:[%s1427_s30 + $0x258] sm:$0xff]  ;;  %v898_v11 = vpack.c.bf16 %v346_v5, %v338_v4  ;;  %v345_v15 = vld [vmem:[%s1427_s30 + $0x240] sm:$0xff]  ;;  %v339_v16 = vld [vmem:[%s1427_s30 + $0x210] sm:$0xff]  ;;  %1087 = vset.pattern.permute.xlu0 %v1243_v47 }
  0x6b   : > { %v695_v61 = vadd.f32 %v694_v58, %v688_v51  ;;  %v930_v13 = vpack.c.bf16 %v348_v7, %v340_v6  ;;  %v347_v17 = vld [vmem:[%s1427_s30 + $0x250] sm:$0xff]  ;;  %v354_v18 = vld [vmem:[%s1427_s30 + $0x288] sm:$0xff]  ;;  %v356_v20 = vld [vmem:[%s1427_s30 + $0x298] sm:$0xff]  ;;  %v900_v22 = vpack.c.bf16 %v345_v15, %v337_v14 }
  0x6c   : > { %v362_v19 = vld [vmem:[%s1427_s30 + $0x2c8] sm:$0xff]  ;;  %v364_v21 = vld [vmem:[%s1427_s30 + $0x2d8] sm:$0xff]  ;;  %v932_v23 = vpack.c.bf16 %v347_v17, %v339_v16  ;;  %v353_v26 = vld [vmem:[%s1427_s30 + $0x280] sm:$0xff] }
  0x6d   : > { %v696_v3 = vadd.f32 %v695_v61, %v689_v57  ;;  %v902_v24 = vpack.c.bf16 %v362_v19, %v354_v18  ;;  %v934_v25 = vpack.c.bf16 %v364_v21, %v356_v20  ;;  %v361_v27 = vld [vmem:[%s1427_s30 + $0x2c0] sm:$0xff]  ;;  %v355_v28 = vld [vmem:[%s1427_s30 + $0x290] sm:$0xff]  ;;  %v370_v30 = vld [vmem:[%s1427_s30 + $0x308] sm:$0xff] }
  0x6e   : > { %v363_v29 = vld [vmem:[%s1427_s30 + $0x2d0] sm:$0xff]  ;;  %v378_v32 = vld [vmem:[%s1427_s30 + $0x348] sm:$0xff]  ;;  %v372_v34 = vld [vmem:[%s1427_s30 + $0x318] sm:$0xff]  ;;  %v904_v36 = vpack.c.bf16 %v361_v27, %v353_v26 }
  0x6f   : > { %v697_v9 = vadd.f32 %v696_v3, %v690_v60  ;;  %v380_v35 = vld [vmem:[%s1427_s30 + $0x358] sm:$0xff]  ;;  %v936_v37 = vpack.c.bf16 %v363_v29, %v355_v28  ;;  %v906_v38 = vpack.c.bf16 %v378_v32, %v370_v30  ;;  %v369_v40 = vld [vmem:[%s1427_s30 + $0x300] sm:$0xff]  ;;  %v371_v43 = vld [vmem:[%s1427_s30 + $0x310] sm:$0xff] }
  0x70   : > { %893 = vmatpush1.bf16.xpose.msra.mxu0 %v892_v50  ;;  %v938_v39 = vpack.c.bf16 %v380_v35, %v372_v34  ;;  %v377_v42 = vld [vmem:[%s1427_s30 + $0x340] sm:$0xff]  ;;  %v379_v44 = vld [vmem:[%s1427_s30 + $0x350] sm:$0xff]  ;;  %v386_v45 = vld [vmem:[%s1427_s30 + $0x388] sm:$0xff] }
  0x71   : > { %925 = vmatpush1.bf16.xpose.msra.mxu1 %v924_v53  ;;  %895 = vmatprep.subr.bf16.mxu0 %v894_v54  ;;  %v698_v12 = vadd.f32 %v697_v9, %v691_v2  ;;  %v394_v46 = vld [vmem:[%s1427_s30 + $0x3c8] sm:$0xff]  ;;  %v388_v48 = vld [vmem:[%s1427_s30 + $0x398] sm:$0xff]  ;;  %v908_v51 = vpack.c.bf16 %v377_v42, %v369_v40  ;;  %v940_v52 = vpack.c.bf16 %v379_v44, %v371_v43  ;;  %v393_v57 = vld [vmem:[%s1427_s30 + $0x3c0] sm:$0xff] }
  0x72   : > { %927 = vmatprep.subr.bf16.mxu1 %v926_v56  ;;  %v396_v50 = vld [vmem:[%s1427_s30 + $0x3d8] sm:$0xff]  ;;  %v910_v53 = vpack.c.bf16 %v394_v46, %v386_v45  ;;  %v385_v56 = vld [vmem:[%s1427_s30 + $0x380] sm:$0xff]  ;;  %v387_v58 = vld [vmem:[%s1427_s30 + $0x390] sm:$0xff] }
  0x73   : > { %699 = vadd.xlane.f32.xlu0 %v698_v12  ;;  %v942_v54 = vpack.c.bf16 %v396_v50, %v388_v48  ;;  %v395_v60 = vld [vmem:[%s1427_s30 + $0x3d0] sm:$0xff]  ;;  %v278_v61 = vld [vmem:[%s1427_s30 + $0x28] sm:$0xff]  ;;  %v280_v63 = vld [vmem:[%s1427_s30 + $0x38] sm:$0xff]  ;;  %v912_v1 = vpack.c.bf16 %v393_v57, %v385_v56 }
  0x74   : > { %v286_v62 = vld [vmem:[%s1427_s30 + $0x68] sm:$0xff]  ;;  %v288_v0 = vld [vmem:[%s1427_s30 + $0x78] sm:$0xff]  ;;  %v944_v2 = vpack.c.bf16 %v395_v60, %v387_v58  ;;  %v277_v5 = vld [vmem:[%s1427_s30 + $0x20] sm:$0xff] }
  0x75   : > { %v946_v3 = vpack.c.bf16 %v286_v62, %v278_v61  ;;  %v978_v4 = vpack.c.bf16 %v288_v0, %v280_v63  ;;  %v285_v6 = vld [vmem:[%s1427_s30 + $0x60] sm:$0xff]  ;;  %v279_v7 = vld [vmem:[%s1427_s30 + $0x30] sm:$0xff]  ;;  %v294_v9 = vld [vmem:[%s1427_s30 + $0xa8] sm:$0xff] }
  0x76   : > { %v304_v12 = vld [vmem:[%s1427_s30 + $0xf8] sm:$0xff]  ;;  %v293_v17 = vld [vmem:[%s1427_s30 + $0xa0] sm:$0xff]  ;;  %v295_v19 = vld [vmem:[%s1427_s30 + $0xb0] sm:$0xff] }
  0x77   : > { %v301_v18 = vld [vmem:[%s1427_s30 + $0xe0] sm:$0xff]  ;;  %v303_v20 = vld [vmem:[%s1427_s30 + $0xf0] sm:$0xff]  ;;  %v310_v21 = vld [vmem:[%s1427_s30 + $0x128] sm:$0xff] }
  0x78   : > { %897 = vmatpush1.bf16.xpose.msra.mxu0 %v896_v8  ;;  %v287_v8 = vld [vmem:[%s1427_s30 + $0x70] sm:$0xff]  ;;  %v309_v27 = vld [vmem:[%s1427_s30 + $0x120] sm:$0xff]  ;;  %v326_v30 = vld [vmem:[%s1427_s30 + $0x1a8] sm:$0xff] }
  0x79   : > { %929 = vmatpush1.bf16.xpose.msra.mxu1 %v928_v10  ;;  %899 = vmatprep.subr.bf16.mxu0 %v898_v11  ;;  %v302_v10 = vld [vmem:[%s1427_s30 + $0xe8] sm:$0xff]  ;;  %v296_v11 = vld [vmem:[%s1427_s30 + $0xb8] sm:$0xff]  ;;  %v980_v14 = vpack.c.bf16 %v287_v8, %v279_v7  ;;  %v317_v28 = vld [vmem:[%s1427_s30 + $0x160] sm:$0xff] }
  0x7a   : > { %931 = vmatprep.subr.bf16.mxu1 %v930_v13  ;;  %v948_v13 = vpack.c.bf16 %v285_v6, %v277_v5  ;;  %v950_v15 = vpack.c.bf16 %v302_v10, %v294_v9  ;;  %v982_v16 = vpack.c.bf16 %v304_v12, %v296_v11  ;;  %v319_v29 = vld [vmem:[%s1427_s30 + $0x170] sm:$0xff]  ;;  %v328_v32 = vld [vmem:[%s1427_s30 + $0x1b8] sm:$0xff]  ;;  %v956_v35 = vpack.c.bf16 %v317_v28, %v309_v27  ;;  %v333_v40 = vld [vmem:[%s1427_s30 + $0x1e0] sm:$0xff] }
  0x7b   : > { %v336_v34 = vld [vmem:[%s1427_s30 + $0x1f8] sm:$0xff]  ;;  %v327_v42 = vld [vmem:[%s1427_s30 + $0x1b0] sm:$0xff]  ;;  %v342_v44 = vld [vmem:[%s1427_s30 + $0x228] sm:$0xff] }
  0x7c   : > { %v335_v43 = vld [vmem:[%s1427_s30 + $0x1f0] sm:$0xff]  ;;  %v350_v45 = vld [vmem:[%s1427_s30 + $0x268] sm:$0xff]  ;;  %v344_v46 = vld [vmem:[%s1427_s30 + $0x238] sm:$0xff] }
  0x7d   : > { %v352_v47 = vld [vmem:[%s1427_s30 + $0x278] sm:$0xff]  ;;  %v992_v50 = vpack.c.bf16 %v335_v43, %v327_v42  ;;  %v343_v56 = vld [vmem:[%s1427_s30 + $0x230] sm:$0xff]  ;;  %v358_v58 = vld [vmem:[%s1427_s30 + $0x2a8] sm:$0xff] }
  0x7e   : > { %v351_v57 = vld [vmem:[%s1427_s30 + $0x270] sm:$0xff]  ;;  %v366_v60 = vld [vmem:[%s1427_s30 + $0x2e8] sm:$0xff]  ;;  %v360_v61 = vld [vmem:[%s1427_s30 + $0x2b8] sm:$0xff] }
  0x7f   : > { %v368_v62 = vld [vmem:[%s1427_s30 + $0x2f8] sm:$0xff]  ;;  %v996_v0 = vpack.c.bf16 %v351_v57, %v343_v56  ;;  %v359_v5 = vld [vmem:[%s1427_s30 + $0x2b0] sm:$0xff]  ;;  %v374_v7 = vld [vmem:[%s1427_s30 + $0x328] sm:$0xff] }
  0x80   : > { %901 = vmatpush1.bf16.xpose.msra.mxu0 %v900_v22  ;;  %v318_v22 = vld [vmem:[%s1427_s30 + $0x168] sm:$0xff]  ;;  %v367_v6 = vld [vmem:[%s1427_s30 + $0x2f0] sm:$0xff]  ;;  %v376_v9 = vld [vmem:[%s1427_s30 + $0x338] sm:$0xff] }
  0x81   : > { %933 = vmatpush1.bf16.xpose.msra.mxu1 %v932_v23  ;;  %903 = vmatprep.subr.bf16.mxu0 %v902_v24  ;;  %v952_v23 = vpack.c.bf16 %v301_v18, %v293_v17  ;;  %v984_v24 = vpack.c.bf16 %v303_v20, %v295_v19  ;;  %v382_v8 = vld [vmem:[%s1427_s30 + $0x368] sm:$0xff]  ;;  %v384_v10 = vld [vmem:[%s1427_s30 + $0x378] sm:$0xff]  ;;  %v1000_v12 = vpack.c.bf16 %v367_v6, %v359_v5  ;;  %v375_v17 = vld [vmem:[%s1427_s30 + $0x330] sm:$0xff] }
  0x82   : > { %935 = vmatprep.subr.bf16.mxu1 %v934_v25  ;;  %v954_v25 = vpack.c.bf16 %v318_v22, %v310_v21  ;;  %v383_v18 = vld [vmem:[%s1427_s30 + $0x370] sm:$0xff]  ;;  %v390_v19 = vld [vmem:[%s1427_s30 + $0x3a8] sm:$0xff]  ;;  %v392_v21 = vld [vmem:[%s1427_s30 + $0x3b8] sm:$0xff] }
  0x83   : > { %v398_v20 = vld [vmem:[%s1427_s30 + $0x3e8] sm:$0xff]  ;;  %v400_v22 = vld [vmem:[%s1427_s30 + $0x3f8] sm:$0xff]  ;;  %v391_v27 = vld [vmem:[%s1427_s30 + $0x3b0] sm:$0xff] }
  0x84   : > { %v399_v28 = vld [vmem:[%s1427_s30 + $0x3f0] sm:$0xff] }
  0x88   : > { %905 = vmatpush1.bf16.xpose.msra.mxu0 %v904_v36 }
  0x89   : > { %937 = vmatpush1.bf16.xpose.msra.mxu1 %v936_v37  ;;  %907 = vmatprep.subr.bf16.mxu0 %v906_v38  ;;  %v990_v38 = vpack.c.bf16 %v336_v34, %v328_v32 }
  0x8a   : > { %939 = vmatprep.subr.bf16.mxu1 %v938_v39  ;;  %v325_v39 = vld [vmem:[%s1427_s30 + $0x1a0] sm:$0xff] }
  0x8b   : > { %v960_v48 = vpack.c.bf16 %v333_v40, %v325_v39 }
  0x90   : > { %909 = vmatpush1.bf16.xpose.msra.mxu0 %v908_v51  ;;  %v962_v51 = vpack.c.bf16 %v350_v45, %v342_v44 }
  0x91   : > { %941 = vmatpush1.bf16.xpose.msra.mxu1 %v940_v52  ;;  %911 = vmatprep.subr.bf16.mxu0 %v910_v53  ;;  %v994_v52 = vpack.c.bf16 %v352_v47, %v344_v46  ;;  %v341_v53 = vld [vmem:[%s1427_s30 + $0x220] sm:$0xff] }
  0x92   : > { %943 = vmatprep.subr.bf16.mxu1 %v942_v54  ;;  %v349_v54 = vld [vmem:[%s1427_s30 + $0x260] sm:$0xff] }
  0x93   : > { %v964_v63 = vpack.c.bf16 %v349_v54, %v341_v53  ;;  %v875_v54 = vld [vmem:[%s256_s18] ss:$0 sm:$0xff] }
  0x98   : > { %913 = vmatpush1.bf16.xpose.msra.mxu0 %v912_v1  ;;  %v966_v1 = vpack.c.bf16 %v366_v60, %v358_v58 }
  0x99   : > { %945 = vmatpush1.bf16.xpose.msra.mxu1 %v944_v2  ;;  %947 = vmatprep.subr.bf16.mxu0 %v946_v3  ;;  %v998_v2 = vpack.c.bf16 %v368_v62, %v360_v61  ;;  %v357_v3 = vld [vmem:[%s1427_s30 + $0x2a0] sm:$0xff] }
  0x9a   : > { %979 = vmatprep.subr.bf16.mxu1 %v978_v4  ;;  %v365_v4 = vld [vmem:[%s1427_s30 + $0x2e0] sm:$0xff] }
  0x9b   : > { %v968_v11 = vpack.c.bf16 %v365_v4, %v357_v3 }
  0x9f   : > { %466 = vmatmul.mubr.f32.vlgmr.msra.gmra.mrb[0].mxu0 %v1454_v31  ;;  %v312_v31 = vld [vmem:[%s1427_s30 + $0x138] sm:$0xff] }
  0xa0   : > { %536 = vmatmul.mubr.f32.vlgmr.msra.gmra.mrb[0].mxu1 %v1456_v33  ;;  %949 = vmatpush1.bf16.xpose.msra.mxu0 %v948_v13  ;;  %v320_v33 = vld [vmem:[%s1427_s30 + $0x178] sm:$0xff]  ;;  %v970_v13 = vpack.c.bf16 %v382_v8, %v374_v7 }
  0xa1   : > { %981 = vmatpush1.bf16.xpose.msra.mxu1 %v980_v14  ;;  %951 = vmatprep.subr.bf16.mxu0 %v950_v15  ;;  %v986_v26 = vpack.c.bf16 %v320_v33, %v312_v31  ;;  %v1002_v14 = vpack.c.bf16 %v384_v10, %v376_v9  ;;  %v373_v15 = vld [vmem:[%s1427_s30 + $0x320] sm:$0xff]  ;;  %v1004_v33 = vpack.c.bf16 %v383_v18, %v375_v17 }
  0xa2   : > { %983 = vmatprep.subr.bf16.mxu1 %v982_v16  ;;  %605 = vmatprep.mubr.f32.mxu0 %v1472_v49  ;;  %v311_v49 = vld [vmem:[%s1427_s30 + $0x130] sm:$0xff]  ;;  %v381_v16 = vld [vmem:[%s1427_s30 + $0x360] sm:$0xff] }
  0xa3   : > { %675 = vmatprep.mubr.f32.mxu1 %v1480_v59  ;;  %v334_v59 = vld [vmem:[%s1427_s30 + $0x1e8] sm:$0xff]  ;;  %v988_v36 = vpack.c.bf16 %v319_v29, %v311_v49  ;;  %v972_v31 = vpack.c.bf16 %v381_v16, %v373_v15  ;;  %v1008_v29 = vpack.c.bf16 %v399_v28, %v391_v27 }
  0xa4   : > { %v958_v37 = vpack.c.bf16 %v334_v59, %v326_v30  ;;  %v683_v30 = vld [vmem:[#allocation2] sm:$0xff] }
  0xa8   : > { %953 = vmatpush1.bf16.xpose.msra.mxu0 %v952_v23  ;;  %v974_v23 = vpack.c.bf16 %v398_v20, %v390_v19 }
  0xa9   : > { %985 = vmatpush1.bf16.xpose.msra.mxu1 %v984_v24  ;;  %955 = vmatprep.subr.bf16.mxu0 %v954_v25  ;;  %v1006_v24 = vpack.c.bf16 %v400_v22, %v392_v21  ;;  %v389_v25 = vld [vmem:[%s1427_s30 + $0x3a0] sm:$0xff] }
  0xaa   : > { %987 = vmatprep.subr.bf16.mxu1 %v986_v26  ;;  %v397_v26 = vld [vmem:[%s1427_s30 + $0x3e0] sm:$0xff] }
  0xab   : > { %v976_v49 = vpack.c.bf16 %v397_v26, %v389_v25 }
  0xb0   : > { %957 = vmatpush1.bf16.xpose.msra.mxu0 %v956_v35 }
  0xb1   : > { %989 = vmatpush1.bf16.xpose.msra.mxu1 %v988_v36  ;;  %959 = vmatprep.subr.bf16.mxu0 %v958_v37 }
  0xb2   : > { %991 = vmatprep.subr.bf16.mxu1 %v990_v38 }
  0xb8   : > { %961 = vmatpush1.bf16.xpose.msra.mxu0 %v960_v48 }
  0xb9   : > { %993 = vmatpush1.bf16.xpose.msra.mxu1 %v992_v50  ;;  %963 = vmatprep.subr.bf16.mxu0 %v962_v51 }
  0xba   : > { %995 = vmatprep.subr.bf16.mxu1 %v994_v52 }
  0xc0   : > { %965 = vmatpush1.bf16.xpose.msra.mxu0 %v964_v63 }
  0xc1   : > { %997 = vmatpush1.bf16.xpose.msra.mxu1 %v996_v0  ;;  %967 = vmatprep.subr.bf16.mxu0 %v966_v1 }
  0xc2   : > { %999 = vmatprep.subr.bf16.mxu1 %v998_v2 }
  0xc8   : > { %969 = vmatpush1.bf16.xpose.msra.mxu0 %v968_v11 }
  0xc9   : > { %1001 = vmatpush1.bf16.xpose.msra.mxu1 %v1000_v12  ;;  %971 = vmatprep.subr.bf16.mxu0 %v970_v13 }
  0xca   : > { %1003 = vmatprep.subr.bf16.mxu1 %v1002_v14 }
  0xd0   : > { %973 = vmatpush1.bf16.xpose.msra.mxu0 %v972_v31 }
  0xd1   : > { %1005 = vmatpush1.bf16.xpose.msra.mxu1 %v1004_v33  ;;  %975 = vmatprep.subr.bf16.mxu0 %v974_v23 }
  0xd2   : > { %1007 = vmatprep.subr.bf16.mxu1 %v1006_v24 }
  0xd8   : > { %977 = vmatpush1.bf16.xpose.msra.mxu0 %v976_v49 }
  0xd9   : > { %1009 = vmatpush1.bf16.xpose.msra.mxu1 %v1008_v29 }
  0xdf   : > { %606 = vmatmul.mubr.f32.vlgmr.msra.gmra.mrb[2].mxu0 %v1465_v41 }
  0xe0   : > { %676 = vmatmul.mubr.f32.vlgmr.msra.gmra.mrb[2].mxu1 %v1476_v55 }
 0x100   : > { %v700_v59 = vpop.xlane.xlu0 %699 }
 0x101   : > { %v701_v32 = vadd.f32 %v700_v59, %v683_v30 }
 0x103   : > { %703 = vst.msk [vmem:[#allocation2] sm:$0xff] %vm262_vm0, %v701_v32 }
 0x10a   : > { %v707_v34 = vld [vmem:[#allocation2] sm:$0xff] }
 0x10b   : > { %1088 = vrsqrt.f32 %v707_v34  ;;  %vm710_vm1 = vcmp.eq.f32.partialorder %v707_v34, inf  ;;  %v713_v36 = vand.u32 2147483648, %v707_v34  ;;  %vm712_vm2 = vcmp.eq.f32.partialorder %v707_v34, 0.0 }
 0x115   : > { %v1089_v35 = vpop.eup %1088 }
 0x116   : > { %v709_v37 = vmul.f32 %v1089_v35, %v707_v34 }
 0x118   : > { %v711_v38 = vsel %vm710_vm1, %v707_v34, %v709_v37 }
 0x119   : > { %v714_v39 = vsel %vm712_vm2, %v713_v36, %v711_v38 }
 0x11a   : > { %v715_v41 = vadd.f32 1e-06, %v714_v39 }
 0x11c   : > { %1090 = vrcp.f32 %v715_v41 }
 0x126   : > { %v1091_v55 = vpop.eup %1090 }
 0x127   : > { %v717_v40 = vmul.f32 11.111111, %v1091_v55 }
 0x129   : > { %721 = vperm.xlu0 %1087, %v717_v40  }
 0x172   : > { %v467_v42 = vpop.f32.mrb[0].mxu0 }
 0x173   : > { %v469_v43 = vpop.f32.mrb[1].mxu0  ;;  %v537_v44 = vpop.f32.mrb[0].mxu1 }
 0x174   : > { %v538_v45 = vadd.f32 %v537_v44, %v467_v42  ;;  %v539_v46 = vpop.f32.mrb[1].mxu1 }
 0x1a8   : > { %v722_v56 = vpop.permute.xlu0 %721 }
 0x1b2   : > { %v607_v47 = vpop.f32.mrb[2].mxu0 }
 0x1b3   : > { %v608_v48 = vadd.f32 %v607_v47, %v538_v45  ;;  %v609_v50 = vpop.f32.mrb[3].mxu0  ;;  %v677_v51 = vpop.f32.mrb[2].mxu1 }
 0x1b4   : > { %v679_v52 = vpop.f32.mrb[3].mxu1 }
 0x1b5   : > { %v678_v53 = vadd.f32 %v677_v51, %v608_v48 }
 0x1b7   : > { %v724_v57 = vmul.f32 %v722_v56, %v678_v53 }
 0x1b9   : > { %v732_v58 = vmul.f32 %v875_v54, %v724_v57 }
 0x1bb   : > { %733 = vst [vmem:[%s250_s5] sm:$0xff] %v732_v58 }
 0x1bc   : > { %1163 = shalt.err (!%p1160_p13)
}
 0x1bd   : > { %s1164_s9 = scalar_lea.hbm %s1603_s19, 128  ;;  %s1168_s23 = scalar_lea.hbm %s1655_s3, 256 }
 0x1be   : > { %p1165_p2 = scmp.ne.s32.totalorder %s1603_s19, %s1164_s9  ;;  %p1169_p4 = scmp.lt.u32.totalorder %s1603_s19, %s1655_s3 }
 0x1bf   : > { %p1170_p8 = scmp.lt.u32.totalorder %s1168_s23, %s1164_s9  ;;  %p1172_p10 = scmp.lt.u32.totalorder %s1164_s9, %s1603_s19 }
 0x1c0   : > { %p1166_p6 = pnand %p1165_p2, %p1676_p11 }
 0x1c1   : > { %p1171_p5 = por %p1170_p8, %p1169_p4 }
 0x1c2   : > { %p1167_p12 = pneg %p1166_p6 }
 0x1c3   : > { %p1173_p1 = por %p1172_p10, %p1171_p5 }
 0x1c5   : > { %p1174_p0 = pnand %p1173_p1, %p1167_p12 }
 0x1c7   : > { %1177 = shalt.err (!%p1174_p0)
}
 0x1c8   : > { %1016 = dma.vmem_to_hbm [thread:$0]  (%p1676_p11), %s1605_s20, 128, %s1603_s19, %s735_s27  }
 0x1c9 PF: > { %s762_s18 = sand.u32 1, %s1216_s12   ;;  %p1677_p9 = scmp.ne.s32.totalorder %s1666_s25, 0 }
 0x1ca   : > { %p1678_p3 = scmp.ge.s32.totalorder %s1236_s17, 2  ;;  %s763_s22 = scalar_lea.sflag [#allocation5], %s762_s18 }
 0x1cc   : > { %p1027_p7 = pnand %p1678_p3, %p1677_p9 }
 0x1ce   : > { %1211 = dma.done.wait (!%p1027_p7), %s763_s22, 128  }
 0x1cf   : > { %1213 = vsyncadd (!%p1027_p7), %s763_s22, 4294967168  ;;  %s20_s17 = sadd.s32 1, %s1236_s17   ;;  %s1679_s12 = smov %s1220_s13 }
 0x1d0   : > { %p17_p13 = scmp.ge.s32.totalorder %s20_s17, 4   ;;  %s1680_s13 = smov %s1224_s14 }
 0x1d1   : > { %s1681_s14 = smov %s1384_s28  ;;  %s1682_s15 = smov %s1232_s16 }
 0x1d2   : > { %s1683_s16 = smov %s1685_s4  ;;  %19 = sbr.rel (!%p17_p13) target bundleno = 7 (0x7), region = 94 }
 0x1d9   :  { %768 = vsyncpa [#allocation4], 1 }
 0x1da   :  { %770 = vsyncpa [#allocation4 + $0x1], 1 }
 0x1db   :  { %771 = vsyncpa [#allocation7], 1 }
 0x1dc   :  { %773 = vsyncpa [#allocation7 + $0x1], 1 }
 0x1dd   :  { %774 = vsyncpa [#allocation5], 1 }
 0x1de   :  { %776 = vsyncpa [#allocation5 + $0x1], 1 }

</bundles_post_ra>
